<compile_context>
chip_gen: v7x
topology: tpu7x:2x2x1
jax: 0.10.0
libtpu: 0.0.40
codegen_flags: <defaults>
</compile_context>

<pallas_src>
import functools

import jax
import jax.numpy as jnp
from jax import lax
from jax.experimental import pallas as pl
from jax.experimental.pallas import tpu as pltpu

LANE = 128
# Use the fused single-block kernel while every operand fits comfortably under
# the default 32 MiB scoped-VMEM limit (leave headroom for double buffers).
FUSED_VMEM_BUDGET = 24 << 20


def _round_up(x, m):
    return (x + m - 1) // m * m


def _pick_tile(n_pad):
    for t in (512, 256, 128):
        if n_pad % t == 0:
            return t
    return LANE  # n_pad is always a multiple of LANE


# -----------------------------------------------------------------------------
# Path A: fully fused single-block kernel (small N)
# -----------------------------------------------------------------------------
def _fused_iiside_kernel(adj_ref, x_ref, feats_ref, w_ref, b_ref, o_ref, *,
                         num_layers, emb_dim):
    # 1) graph propagation: x <- mAdj @ x, statically unrolled.
    adj = adj_ref[...]
    x = x_ref[...]
    for _ in range(num_layers):
        x = jnp.dot(adj, x, preferred_element_type=jnp.float32)

    # 2) both projectors in one MXU pass (block-diagonal packed weights).
    proj = jnp.dot(feats_ref[...], w_ref[...],
                   preferred_element_type=jnp.float32) + b_ref[...]

    # 3) single lane-dense store: [items | vProj | tProj | 0-pad].
    n = o_ref.shape[0]
    pad_w = o_ref.shape[1] - (emb_dim + proj.shape[1])
    parts = [x, proj]
    if pad_w:
        parts.append(jnp.zeros((n, pad_w), jnp.float32))
    o_ref[...] = jnp.concatenate(parts, axis=-1)


def fused_forward(adj, item_embds, feats_padded, w_blk, b_cat, *,
                  num_layers, emb_dim):
    n = adj.shape[0]
    k_pad = feats_padded.shape[1]
    out_w = _round_up(3 * emb_dim, LANE)

    kernel = functools.partial(_fused_iiside_kernel,
                               num_layers=num_layers, emb_dim=emb_dim)

    flops = 2 * num_layers * n * n * emb_dim + 2 * n * k_pad * (2 * emb_dim)
    bytes_accessed = 4 * (n * n + n * emb_dim + n * k_pad
                          + k_pad * 2 * emb_dim + 2 * emb_dim + n * out_w)

    out = pl.pallas_call(
        kernel,
        out_shape=jax.ShapeDtypeStruct((n, out_w), jnp.float32),
        in_specs=[
            pl.BlockSpec((n, n), lambda: (0, 0)),                # mAdj
            pl.BlockSpec((n, emb_dim), lambda: (0, 0)),          # itemEmbds
            pl.BlockSpec((n, k_pad), lambda: (0, 0)),            # [vFeats|tFeats|0]
            pl.BlockSpec((k_pad, 2 * emb_dim), lambda: (0, 0)),  # blkdiag(vW,tW)
            pl.BlockSpec((1, 2 * emb_dim), lambda: (0, 0)),      # [vB|tB]
        ],
        out_specs=pl.BlockSpec((n, out_w), lambda: (0, 0)),
        cost_estimate=pl.CostEstimate(flops=flops, transcendentals=0,
                                      bytes_accessed=bytes_accessed),
    )(adj, item_embds, feats_padded, w_blk, b_cat)

    return (out[:, :emb_dim],
            out[:, emb_dim:2 * emb_dim],
            out[:, 2 * emb_dim:3 * emb_dim])


# -----------------------------------------------------------------------------
# Path B: tiled grid kernels (large N)
# -----------------------------------------------------------------------------
def _matmul_acc_kernel(a_ref, b_ref, o_ref, acc_ref):
    @pl.when(pl.program_id(1) == 0)
    def _():
        acc_ref[...] = jnp.zeros_like(acc_ref)

    acc_ref[...] += jnp.dot(a_ref[...], b_ref[...],
                            preferred_element_type=jnp.float32)

    @pl.when(pl.program_id(1) == pl.num_programs(1) - 1)
    def _():
        o_ref[...] = acc_ref[...].astype(o_ref.dtype)


def propagate_tiled(adj, x, *, num_layers, tm=None, tk=None):
    """x <- adj @ x, repeated num_layers times, tiled over (rows, contraction)."""
    n, d = x.shape
    n_pad = _round_up(n, LANE)
    tile = _pick_tile(n_pad)
    tm = tm or tile
    tk = tk or tile
    if n_pad != n:  # zero padding is exact
        adj = jnp.pad(adj, ((0, n_pad - n), (0, n_pad - n)))
        x = jnp.pad(x, ((0, n_pad - n), (0, 0)))

    call = pl.pallas_call(
        _matmul_acc_kernel,
        out_shape=jax.ShapeDtypeStruct((n_pad, d), jnp.float32),
        grid_spec=pltpu.PrefetchScalarGridSpec(
            num_scalar_prefetch=0,
            grid=(n_pad // tm, n_pad // tk),
            in_specs=[pl.BlockSpec((tm, tk), lambda i, k: (i, k)),
                      pl.BlockSpec((tk, d), lambda i, k: (k, 0))],
            out_specs=pl.BlockSpec((tm, d), lambda i, k: (i, 0)),
            scratch_shapes=[pltpu.VMEM((tm, d), jnp.float32)]),
        compiler_params=pltpu.CompilerParams(
            dimension_semantics=("parallel", "arbitrary")),
    )
    for _ in range(num_layers):
        x = call(adj, x)
    return x[:n] if n_pad != n else x


def _projector_kernel(feats_ref, w_ref, b_ref, o_ref):
    proj = jnp.dot(feats_ref[...], w_ref[...],
                   preferred_element_type=jnp.float32) + b_ref[...]
    pad_w = o_ref.shape[1] - proj.shape[1]
    if pad_w:
        proj = jnp.concatenate(
            [proj, jnp.zeros((proj.shape[0], pad_w), jnp.float32)], axis=-1)
    o_ref[...] = proj  # lane-dense unmasked store


def project_tiled(feats_padded, w_blk, b_cat, *, emb_dim, tm=None):
    n, k_pad = feats_padded.shape
    n_pad = _round_up(n, LANE)
    tm = tm or _pick_tile(n_pad)
    if n_pad != n:
        feats_padded = jnp.pad(feats_padded, ((0, n_pad - n), (0, 0)))
    out_w = _round_up(2 * emb_dim, LANE)

    out = pl.pallas_call(
        _projector_kernel,
        out_shape=jax.ShapeDtypeStruct((n_pad, out_w), jnp.float32),
        grid_spec=pltpu.PrefetchScalarGridSpec(
            num_scalar_prefetch=0,
            grid=(n_pad // tm,),
            in_specs=[pl.BlockSpec((tm, k_pad), lambda i: (i, 0)),
                      pl.BlockSpec((k_pad, 2 * emb_dim), lambda i: (0, 0)),
                      pl.BlockSpec((1, 2 * emb_dim), lambda i: (0, 0))],
            out_specs=pl.BlockSpec((tm, out_w), lambda i: (i, 0))),
        compiler_params=pltpu.CompilerParams(
            dimension_semantics=("parallel",)),
    )(feats_padded, w_blk, b_cat)

    out = out[:n]
    return out[:, :emb_dim], out[:, emb_dim:2 * emb_dim]


# -----------------------------------------------------------------------------
# Glue: deterministic parameter init + kNN adjacency (mirrors __init__ logic)
# -----------------------------------------------------------------------------
def build_knn_adj(feats, knn_k, num_items):
    """Dense equivalent of get_knn_graph (non-symmetric, deg^-1/2 weights)."""
    norm = jnp.sqrt(jnp.sum(feats * feats, axis=-1, keepdims=True))
    f = feats / jnp.maximum(norm, 1e-12)          # F.normalize(dim=-1)
    sim = f @ f.T
    _, idx = lax.top_k(sim, knn_k)                # k neighbors per row
    rows = jnp.repeat(jnp.arange(num_items), knn_k)
    cols = idx.reshape(-1)
    deg = 1e-7 + jnp.zeros((num_items,), jnp.float32).at[rows].add(1.0)
    dis = deg ** -0.5
    w = dis[rows] * dis[cols]
    adj = jnp.zeros((num_items, num_items), jnp.float32).at[rows, cols].add(w)
    return adj


class IISidePallas:
    def __init__(self, num_items, num_layers, embedding_dim,
                 v_feat_dim, t_feat_dim, knn_k, weight4mAdj, key):
        self.num_items = num_items
        self.num_layers = num_layers
        self.embedding_dim = embedding_dim

        k_vf, k_tf, k_vw, k_vb, k_tw, k_tb = jax.random.split(key, 6)

        # synthetic pretrained multimodal features (nn.Embedding weights)
        self.vFeats = jax.random.normal(k_vf, (num_items, v_feat_dim), jnp.float32)
        self.tFeats = jax.random.normal(k_tf, (num_items, t_feat_dim), jnp.float32)

        # nn.Linear params (stored transposed: [in_dim, out_dim])
        def lin_init(kw, kb, fan_in, fan_out):
            bound = 1.0 / jnp.sqrt(fan_in)
            w = jax.random.uniform(kw, (fan_in, fan_out), jnp.float32, -bound, bound)
            b = jax.random.uniform(kb, (fan_out,), jnp.float32, -bound, bound)
            return w, b

        self.vW, self.vB = lin_init(k_vw, k_vb, v_feat_dim, embedding_dim)
        self.tW, self.tB = lin_init(k_tw, k_tb, t_feat_dim, embedding_dim)

        vAdj = build_knn_adj(self.vFeats, knn_k, num_items)
        tAdj = build_knn_adj(self.tFeats, knn_k, num_items)
        self.mAdj = vAdj * weight4mAdj + tAdj * (1.0 - weight4mAdj)

        # --- Precompute fused/padded operands ONCE (not per forward call) ----
        k_pad = _round_up(v_feat_dim + t_feat_dim, LANE)
        feats_cat = jnp.concatenate([self.vFeats, self.tFeats], axis=-1)
        self.featsPadded = jnp.pad(
            feats_cat, ((0, 0), (0, k_pad - v_feat_dim - t_feat_dim)))
        w_blk = jnp.zeros((k_pad, 2 * embedding_dim), jnp.float32)
        w_blk = w_blk.at[:v_feat_dim, :embedding_dim].set(self.vW)
        w_blk = w_blk.at[v_feat_dim:v_feat_dim + t_feat_dim,
                         embedding_dim:].set(self.tW)
        self.wBlk = w_blk
        self.bCat = jnp.concatenate([self.vB, self.tB]).reshape(1, 2 * embedding_dim)

    def forward(self, itemEmbds):
        n = self.num_items
        k_pad = self.featsPadded.shape[1]
        out_w = _round_up(3 * self.embedding_dim, LANE)
        fused_bytes = 4 * (n * n + n * (self.embedding_dim + k_pad + out_w)
                           + k_pad * 2 * self.embedding_dim
                           + 2 * self.embedding_dim)
        if fused_bytes <= FUSED_VMEM_BUDGET:
            return fused_forward(self.mAdj, itemEmbds, self.featsPadded,
                                 self.wBlk, self.bCat,
                                 num_layers=self.num_layers,
                                 emb_dim=self.embedding_dim)
        items = propagate_tiled(self.mAdj, itemEmbds,
                                num_layers=self.num_layers)
        v, t = project_tiled(self.featsPadded, self.wBlk, self.bCat,
                             emb_dim=self.embedding_dim)
        return items, v, t


# -----------------------------------------------------------------------------
# Main
# -----------------------------------------------------------------------------
if __name__ == "__main__":
    NUM_ITEMS = 64
    NUM_LAYERS = 2
    EMB_DIM = 32
    V_FEAT_DIM = 48
    T_FEAT_DIM = 40
    KNN_K = 4
    WEIGHT4MADJ = 0.6

    key = jax.random.PRNGKey(0)
    k_model, k_emb = jax.random.split(key)

    model = IISidePallas(NUM_ITEMS, NUM_LAYERS, EMB_DIM,
                         V_FEAT_DIM, T_FEAT_DIM, KNN_K, WEIGHT4MADJ, k_model)

    itemEmbds = jax.random.normal(k_emb, (NUM_ITEMS, EMB_DIM), jnp.float32)

    # ---- Path A (fused, small shapes) vs. plain-JAX reference ----
    out_items, out_v, out_t = model.forward(itemEmbds)
    jax.block_until_ready((out_items, out_v, out_t))

    ref_items = itemEmbds
    for _ in range(NUM_LAYERS):
        ref_items = model.mAdj @ ref_items
    ref_v = model.vFeats @ model.vW + model.vB
    ref_t = model.tFeats @ model.tW + model.tB

    assert jnp.allclose(out_items, ref_items, atol=1e-4, rtol=1e-4)
    assert jnp.allclose(out_v, ref_v, atol=1e-4, rtol=1e-4)
    assert jnp.allclose(out_t, ref_t, atol=1e-4, rtol=1e-4)

    # ---- Path B (tiled) checks on the same model (exercises row padding) ----
    items_b = propagate_tiled(model.mAdj, itemEmbds, num_layers=NUM_LAYERS)
    v_b, t_b = project_tiled(model.featsPadded, model.wBlk, model.bCat,
                             emb_dim=EMB_DIM)
    jax.block_until_ready((items_b, v_b, t_b))
    assert jnp.allclose(items_b, ref_items, atol=1e-4, rtol=1e-4)
    assert jnp.allclose(v_b, ref_v, atol=1e-4, rtol=1e-4)
    assert jnp.allclose(t_b, ref_t, atol=1e-4, rtol=1e-4)

    # ---- Path B multi-tile reduction check (forces a 2x2 grid at N=256) ----
    kA, kX = jax.random.split(jax.random.PRNGKey(1))
    N2, D2 = 256, 32
    adj2 = jax.random.normal(kA, (N2, N2), jnp.float32) / N2
    x2 = jax.random.normal(kX, (N2, D2), jnp.float32)
    got2 = propagate_tiled(adj2, x2, num_layers=2, tm=128, tk=128)
    jax.block_until_ready(got2)
    ref2 = x2
    for _ in range(2):
        ref2 = jnp.dot(adj2, ref2, precision=lax.Precision.HIGHEST)
    assert jnp.allclose(got2, ref2, atol=1e-4, rtol=1e-4)

    print("KERNEL_OK")
</pallas_src>

<mosaic_0001>
module attributes {stable_mosaic.version = 11 : i64} {
  func.func @_fused_iiside_kernel(%arg0: memref<64x64xf32, #tpu.memory_space<vmem>>, %arg1: memref<64x32xf32, #tpu.memory_space<vmem>>, %arg2: memref<64x128xf32, #tpu.memory_space<vmem>>, %arg3: memref<128x64xf32, #tpu.memory_space<vmem>>, %arg4: memref<1x64xf32, #tpu.memory_space<vmem>>, %arg5: memref<64x128xf32, #tpu.memory_space<vmem>>) attributes {dimension_semantics = [], scalar_prefetch = 0 : i64, scratch_operands = 0 : i64, tpu.core_type = #tpu.core_type<tc>} {
    %c0 = arith.constant 0 : index
    %c0_0 = arith.constant 0 : index
    %0 = vector.load %arg0[%c0, %c0_0] : memref<64x64xf32, #tpu.memory_space<vmem>>, vector<64x64xf32>
    %c0_1 = arith.constant 0 : index
    %c0_2 = arith.constant 0 : index
    %1 = vector.load %arg1[%c0_1, %c0_2] : memref<64x32xf32, #tpu.memory_space<vmem>>, vector<64x32xf32>
    %cst = arith.constant dense<0.000000e+00> : vector<64x32xf32>
    %2 = tpu.matmul %0, %1, %cst {dimension_numbers = #tpu.dot_dimension_numbers<[1], [0], [0], [1], [0, 0, 1, 1], [], []>} : vector<64x64xf32>, vector<64x32xf32>, vector<64x32xf32> -> vector<64x32xf32>
    %cst_3 = arith.constant dense<0.000000e+00> : vector<64x32xf32>
    %3 = tpu.matmul %0, %2, %cst_3 {dimension_numbers = #tpu.dot_dimension_numbers<[1], [0], [0], [1], [0, 0, 1, 1], [], []>} : vector<64x64xf32>, vector<64x32xf32>, vector<64x32xf32> -> vector<64x32xf32>
    %c0_4 = arith.constant 0 : index
    %c0_5 = arith.constant 0 : index
    %4 = vector.load %arg2[%c0_4, %c0_5] : memref<64x128xf32, #tpu.memory_space<vmem>>, vector<64x128xf32>
    %c0_6 = arith.constant 0 : index
    %c0_7 = arith.constant 0 : index
    %5 = vector.load %arg3[%c0_6, %c0_7] : memref<128x64xf32, #tpu.memory_space<vmem>>, vector<128x64xf32>
    %cst_8 = arith.constant dense<0.000000e+00> : vector<64x64xf32>
    %6 = tpu.matmul %4, %5, %cst_8 {dimension_numbers = #tpu.dot_dimension_numbers<[1], [0], [0], [1], [0, 0, 1, 1], [], []>} : vector<64x128xf32>, vector<128x64xf32>, vector<64x64xf32> -> vector<64x64xf32>
    %c0_9 = arith.constant 0 : index
    %c0_10 = arith.constant 0 : index
    %7 = vector.load %arg4[%c0_9, %c0_10] : memref<1x64xf32, #tpu.memory_space<vmem>>, vector<1x64xf32>
    %8 = vector.broadcast %7 : vector<1x64xf32> to vector<64x64xf32>
    %9 = arith.addf %6, %8 : vector<64x64xf32>
    %cst_11 = arith.constant 0.000000e+00 : f32
    %10 = vector.broadcast %cst_11 : f32 to vector<64x32xf32>
    %11 = tpu.concatenate %3, %9, %10 in 1 : vector<64x32xf32>, vector<64x64xf32>, vector<64x32xf32> -> vector<64x128xf32>
    %c0_12 = arith.constant 0 : index
    %c0_13 = arith.constant 0 : index
    %12 = vector.load %arg5[%c0_12, %c0_13] : memref<64x128xf32, #tpu.memory_space<vmem>>, vector<64x128xf32>
    tpu.vector_store %arg5[%c0_12, %c0_13], %11 {strides = array<i32>} : memref<64x128xf32, #tpu.memory_space<vmem>>, vector<64x128xf32>,
    return
  }
}

</mosaic_0001>

<bundles_post_ra>
// kernel: tpu_custom_call.1
= control target key start
LH: loop header
LB: loop body
LE: loop exit
PB: predicated region body
PF: predicated region fallthrough
CT: control target
= control target key end

     0   :  { %vm37_vm0 = vcmask 523264   ;;  %s980_s0 = inlined_call_operand.vmem [shape: f32[64,64], index: 0, kind: input, shape index: {}]   ;;  %s981_s1 = inlined_call_operand.vmem [shape: f32[64,32], index: 1, kind: input, shape index: {}]   ;;  %s982_s2 = inlined_call_operand.vmem [shape: f32[64,128], index: 2, kind: input, shape index: {}]   ;;  %s983_s3 = inlined_call_operand.vmem [shape: f32[128,64], index: 3, kind: input, shape index: {}]   ;;  %s984_s4 = inlined_call_operand.vmem [shape: f32[1,64], index: 4, kind: input, shape index: {}]   ;;  %s985_s5 = inlined_call_operand.hbm [shape: f32[64,128], index: 5, kind: output, shape index: {}]  }
   0x1   :  { %v29_v0 = vld [vmem:[%s981_s1] sm:$0xff]  ;;  %v30_v1 = vld [vmem:[%s981_s1 + $0x8] sm:$0xff]  ;;  %v31_v2 = vld [vmem:[%s981_s1 + $0x10] sm:$0xff] }
   0x2   :  { %v655_v3 = vpack.c.bf16 %v30_v1, %v29_v0  ;;  %v32_v4 = vld [vmem:[%s981_s1 + $0x18] sm:$0xff]  ;;  %v33_v6 = vld [vmem:[%s981_s1 + $0x20] sm:$0xff]  ;;  %v34_v7 = vld [vmem:[%s981_s1 + $0x28] sm:$0xff] }
   0x3   :  { %v659_v5 = vpack.c.bf16 %v32_v4, %v31_v2  ;;  %v802_v8 = vld [vmem:[%s980_s0] sm:$0xff]  ;;  %v663_v9 = vpack.c.bf16 %v34_v7, %v33_v6  ;;  %v35_v10 = vld [vmem:[%s981_s1 + $0x30] sm:$0xff]  ;;  %v281_v12 = vld [vmem:[%s983_s3 + $0x8] sm:$0xff] }
   0x4   :  { %656 = vmatprep.subr.bf16.mxu1 %v655_v3  ;;  %571 = vmatprep.mubr.msk.f32.mxu1 %vm37_vm0, %v802_v8  ;;  %v280_v11 = vld [vmem:[%s983_s3] sm:$0xff]  ;;  %v36_v13 = vld [vmem:[%s981_s1 + $0x38] sm:$0xff]  ;;  %v282_v15 = vld [vmem:[%s983_s3 + $0x10] sm:$0xff] }
   0x5   :  { %658 = vmatpush3.bf16.msra.mxu1 %v655_v3  ;;  %v687_v14 = vpack.c.bf16 %v281_v12, %v280_v11  ;;  %v283_v16 = vld [vmem:[%s983_s3 + $0x18] sm:$0xff]  ;;  %v284_v18 = vld [vmem:[%s983_s3 + $0x20] sm:$0xff]  ;;  %v285_v19 = vld [vmem:[%s983_s3 + $0x28] sm:$0xff]  ;;  %v667_v20 = vpack.c.bf16 %v36_v13, %v35_v10 }
   0x6   :  { %660 = vmatprep.subr.bf16.mxu1 %v659_v5  ;;  %v691_v17 = vpack.c.bf16 %v283_v16, %v282_v15  ;;  %v695_v21 = vpack.c.bf16 %v285_v19, %v284_v18  ;;  %v272_v22 = vld [vmem:[%s982_s2] sm:$0xff]  ;;  %v286_v23 = vld [vmem:[%s983_s3 + $0x30] sm:$0xff]  ;;  %v287_v24 = vld [vmem:[%s983_s3 + $0x38] sm:$0xff] }
   0x7   :  { %688 = vmatprep.subr.bf16.mxu0 %v687_v14  ;;  %643 = vmatprep.mubr.f32.mxu0 %v272_v22 }
   0x8   :  { %690 = vmatpush3.bf16.msra.mxu0 %v687_v14 }
   0x9   :  { %662 = vmatpush3.bf16.msra.mxu1 %v659_v5  ;;  %692 = vmatprep.subr.bf16.mxu0 %v691_v17 }
   0xa   :  { %664 = vmatprep.subr.bf16.mxu1 %v663_v9 }
   0xc   :  { %694 = vmatpush3.bf16.msra.mxu0 %v691_v17 }
   0xd   :  { %666 = vmatpush3.bf16.msra.mxu1 %v663_v9 }
   0xe   :  { %668 = vmatprep.subr.bf16.mxu1 %v667_v20 }
   0xf   :  { %10 = vsyncpa [#allocation3], 0  ;;  %696 = vmatprep.subr.bf16.mxu0 %v695_v21  ;;  %v699_v25 = vpack.c.bf16 %v287_v24, %v286_v23  ;;  %v288_v26 = vld [vmem:[%s983_s3 + $0x40] sm:$0xff]  ;;  %v289_v27 = vld [vmem:[%s983_s3 + $0x48] sm:$0xff]  ;;  %s747_s20 = smov 32   ;;  %vm440_vm1 = vcmask 261120  }
  0x10   :  { %v848_v28 = vld [vmem:[%s980_s0 + $0x8] sm:$0xff]  ;;  %v853_v29 = vld [vmem:[%s980_s0 + $0x10] sm:$0xff]  ;;  %698 = vmatpush3.bf16.msra.mxu0 %v695_v21  ;;  %v703_v30 = vpack.c.bf16 %v289_v27, %v288_v26  ;;  %v291_v32 = vld [vmem:[%s983_s3 + $0x58] sm:$0xff]  ;;  %vm449_vm2 = vcmask 785408  }
  0x11   :  { %670 = vmatpush3.bf16.msra.mxu1 %v667_v20  ;;  %700 = vmatprep.subr.bf16.mxu0 %v699_v25  ;;  %v290_v31 = vld [vmem:[%s983_s3 + $0x50] sm:$0xff]  ;;  %v868_v33 = vld [vmem:[%s980_s0 + $0x18] sm:$0xff]  ;;  %v873_v34 = vld [vmem:[%s980_s0 + $0x20] sm:$0xff] }
  0x12   :  { %v707_v35 = vpack.c.bf16 %v291_v32, %v290_v31  ;;  %v292_v36 = vld [vmem:[%s983_s3 + $0x60] sm:$0xff]  ;;  %v293_v37 = vld [vmem:[%s983_s3 + $0x68] sm:$0xff]  ;;  %v893_v39 = vld [vmem:[%s980_s0 + $0x30] sm:$0xff] }
  0x13   :  { %v888_v38 = vld [vmem:[%s980_s0 + $0x28] sm:$0xff]  ;;  %v711_v40 = vpack.c.bf16 %v293_v37, %v292_v36  ;;  %v294_v41 = vld [vmem:[%s983_s3 + $0x70] sm:$0xff]  ;;  %v295_v42 = vld [vmem:[%s983_s3 + $0x78] sm:$0xff] }
  0x14   :  { %572 = vmatmul.mubr.msk.f32.vlgmr.msra.gmra.mrb[0].mxu1 %vm37_vm0, %v848_v28  ;;  %702 = vmatpush3.bf16.msra.mxu0 %v699_v25  ;;  %v908_v43 = vld [vmem:[%s980_s0 + $0x38] sm:$0xff]  ;;  %v715_v44 = vpack.c.bf16 %v295_v42, %v294_v41  ;;  %v273_v45 = vld [vmem:[%s982_s2 + $0x8] sm:$0xff]  ;;  %v274_v46 = vld [vmem:[%s982_s2 + $0x10] sm:$0xff] }
  0x15   :  { %574 = vmatprep.mubr.msk.f32.mxu1 %vm37_vm0, %v853_v29  ;;  %704 = vmatprep.subr.bf16.mxu0 %v703_v30  ;;  %v275_v47 = vld [vmem:[%s982_s2 + $0x18] sm:$0xff]  ;;  %v276_v48 = vld [vmem:[%s982_s2 + $0x20] sm:$0xff]  ;;  %v277_v49 = vld [vmem:[%s982_s2 + $0x28] sm:$0xff] }
  0x16   :  { %v278_v50 = vld [vmem:[%s982_s2 + $0x30] sm:$0xff]  ;;  %v279_v51 = vld [vmem:[%s982_s2 + $0x38] sm:$0xff]  ;;  %v498_v0 = vld [vmem:[%s984_s4] ss:$0 sm:$0xff]  ;;  %s748_s4 = smov [#allocation2]  }
  0x17   :  { %s471_s21 = sshll.u32 %s748_s4, 4  ;;  %s472_s21 = int_to_ptr.vmem [resolvable:$true] %s471_s21 }
  0x18   :  { %575 = vmatmul.mubr.msk.f32.gmra.mrb[2].mxu1 %vm37_vm0, %v868_v33  ;;  %706 = vmatpush3.bf16.msra.mxu0 %v703_v30  ;;  %s723_s22 = scalar_lea.vmem %s472_s21, 1024  ;;  %p728_p1 = scmp.lt.s32.totalorder %s472_s21, %s472_s21 }
  0x19   :  { %577 = vmatprep.mubr.msk.f32.mxu1 %vm37_vm0, %v873_v34  ;;  %708 = vmatprep.subr.bf16.mxu0 %v707_v35  ;;  %p724_p0 = scmp.ne.s32.totalorder %s472_s21, %s723_s22  ;;  %p729_p2 = scmp.lt.s32.totalorder %s723_s22, %s723_s22 }
  0x1b   :  { %p730_p3 = por %p729_p2, %p728_p1 }
  0x1c   :  { %578 = vmatmul.mubr.msk.f32.gmra.mrb[4].mxu1 %vm37_vm0, %v888_v38  ;;  %710 = vmatpush3.bf16.msra.mxu0 %v707_v35 }
  0x1d   :  { %580 = vmatprep.mubr.msk.f32.mxu1 %vm37_vm0, %v893_v39  ;;  %712 = vmatprep.subr.bf16.mxu0 %v711_v40  ;;  %p731_p4 = pnand %p730_p3, %p724_p0 }
  0x20   :  { %581 = vmatmul.mubr.msk.f32.gmra.mrb[6].mxu1 %vm37_vm0, %v908_v43  ;;  %714 = vmatpush3.bf16.msra.mxu0 %v711_v40 }
  0x21   :  { %599 = vmatprep.mubr.msk.f32.mxu1 %vm37_vm0, %v802_v8  ;;  %716 = vmatprep.subr.bf16.mxu0 %v715_v44 }
  0x24   :  { %718 = vmatpush3.bf16.msra.mxu0 %v715_v44 }
  0x27   :  { %644 = vmatmul.mubr.f32.vlgmr.msra.gmra.mrb[0].mxu0 %v273_v45 }
  0x28   :  { %646 = vmatprep.mubr.f32.mxu0 %v274_v46 }
  0x2b   :  { %647 = vmatmul.mubr.f32.gmra.mrb[2].mxu0 %v275_v47 }
  0x2c   :  { %649 = vmatprep.mubr.f32.mxu0 %v276_v48 }
  0x2f   :  { %650 = vmatmul.mubr.f32.gmra.mrb[4].mxu0 %v277_v49 }
  0x30   :  { %652 = vmatprep.mubr.f32.mxu0 %v278_v50 }
  0x33   :  { %653 = vmatmul.mubr.f32.gmra.mrb[6].mxu0 %v279_v51 }
  0xe7   :  { %v573_v52 = vpop.f32.mrb[0].mxu1 }
  0xe8   :  { %v128_v53 = vpop.f32.mrb[1].mxu1 }
  0xe9   :  { %v671_v54 = vpack.c.bf16 %v573_v52, %v128_v53 }
  0xeb   :  { %v576_v55 = vpop.f32.mrb[2].mxu1  ;;  %672 = vmatprep.subr.bf16.mxu1 %v671_v54 }
  0xec   :  { %v138_v56 = vpop.f32.mrb[3].mxu1  ;;  %674 = vmatpush3.bf16.msra.mxu1 %v671_v54 }
  0xed   :  { %v675_v57 = vpack.c.bf16 %v576_v55, %v138_v56 }
  0xef   :  { %v579_v58 = vpop.f32.mrb[4].mxu1  ;;  %676 = vmatprep.subr.bf16.mxu1 %v675_v57 }
  0xf0   :  { %v148_v59 = vpop.f32.mrb[5].mxu1  ;;  %678 = vmatpush3.bf16.msra.mxu1 %v675_v57 }
  0xf1   :  { %v679_v60 = vpack.c.bf16 %v579_v58, %v148_v59 }
  0xf3   :  { %v582_v61 = vpop.f32.mrb[6].mxu1  ;;  %680 = vmatprep.subr.bf16.mxu1 %v679_v60 }
  0xf4   :  { %v158_v62 = vpop.f32.mrb[7].mxu1  ;;  %682 = vmatpush3.bf16.msra.mxu1 %v679_v60 }
  0xf5   :  { %v683_v63 = vpack.c.bf16 %v582_v61, %v158_v62 }
  0xf7   :  { %684 = vmatprep.subr.bf16.mxu1 %v683_v63 }
  0xf8   :  { %686 = vmatpush3.bf16.msra.mxu1 %v683_v63 }
  0xfa   :  { %v645_v1 = vpop.f32.mrb[0].mxu0 }
  0xfb   :  { %600 = vmatmul.mubr.msk.f32.vlgmr.msra.gmra.mrb[8].mxu1 %vm37_vm0, %v848_v28  ;;  %v375_v2 = vadd.f32 %v645_v1, %v498_v0  ;;  %v369_v3 = vpop.f32.mrb[1].mxu0 }
  0xfc   :  { %602 = vmatprep.mubr.msk.f32.mxu1 %vm37_vm0, %v853_v29  ;;  %v370_v4 = vadd.f32 %v498_v0, %v369_v3 }
  0xfd   :  { %418 = vrot.lane.b32.xlu0 %v375_v2, %s747_s20 }
  0xfe   :  { %v648_v5 = vpop.f32.mrb[2].mxu0 }
  0xff   :  { %603 = vmatmul.mubr.msk.f32.gmra.mrb[10].mxu1 %vm37_vm0, %v868_v33  ;;  %v385_v6 = vadd.f32 %v648_v5, %v498_v0  ;;  %v379_v7 = vpop.f32.mrb[3].mxu0 }
 0x100   :  { %605 = vmatprep.mubr.msk.f32.mxu1 %vm37_vm0, %v873_v34  ;;  %v380_v8 = vadd.f32 %v498_v0, %v379_v7 }
 0x101   :  { %422 = vrot.lane.b32.xlu1 %v385_v6, %s747_s20  ;;  %416 = vrot.lane.b32.xlu0 %v370_v4, %s747_s20 }
 0x102   :  { %v651_v9 = vpop.f32.mrb[4].mxu0 }
 0x103   :  { %606 = vmatmul.mubr.msk.f32.gmra.mrb[12].mxu1 %vm37_vm0, %v888_v38  ;;  %v389_v10 = vpop.f32.mrb[5].mxu0  ;;  %v395_v12 = vadd.f32 %v651_v9, %v498_v0 }
 0x104   :  { %608 = vmatprep.mubr.msk.f32.mxu1 %vm37_vm0, %v893_v39  ;;  %v390_v11 = vadd.f32 %v498_v0, %v389_v10 }
 0x105   :  { %420 = vrot.lane.b32.xlu1 %v380_v8, %s747_s20 }
 0x106   :  { %v654_v13 = vpop.f32.mrb[6].mxu0  ;;  %424 = vrot.lane.b32.xlu0 %v390_v11, %s747_s20 }
 0x107   :  { %609 = vmatmul.mubr.msk.f32.gmra.mrb[14].mxu1 %vm37_vm0, %v908_v43  ;;  %v399_v14 = vpop.f32.mrb[7].mxu0  ;;  %v405_v16 = vadd.f32 %v654_v13, %v498_v0 }
 0x108   :  { %v400_v15 = vadd.f32 %v498_v0, %v399_v14 }
 0x109   :  { %426 = vrot.lane.b32.xlu1 %v395_v12, %s747_s20 }
 0x10a   :  { %428 = vrot.lane.b32.xlu0 %v400_v15, %s747_s20 }
 0x10d   :  { %430 = vrot.lane.b32.xlu1 %v405_v16, %s747_s20 }
 0x16f   :  { %v419_v18 = vpop.permute.xlu0 %418 }
 0x173   :  { %v423_v17 = vpop.permute.xlu1 %422  ;;  %v417_v21 = vpop.permute.xlu0 %416 }
 0x177   :  { %v421_v20 = vpop.permute.xlu1 %420 }
 0x178   :  { %v425_v31 = vpop.permute.xlu0 %424 }
 0x17b   :  { %v427_v28 = vpop.permute.xlu1 %426 }
 0x17c   :  { %v429_v42 = vpop.permute.xlu0 %428 }
 0x17f   :  { %v431_v40 = vpop.permute.xlu1 %430 }
 0x1ce   :  { %v601_v19 = vpop.f32.mrb[8].mxu1 }
 0x1cf   :  { %v442_v22 = vsel %vm440_vm1, %v601_v19, %v419_v18  ;;  %v233_v23 = vpop.f32.mrb[9].mxu1 }
 0x1d0   :  { %v451_v24 = vsel %vm449_vm2, %v442_v22, 0.0  ;;  %v441_v25 = vsel %vm440_vm1, %v233_v23, %v417_v21 }
 0x1d1   :  { %459 = vst [vmem:[#allocation2 + $0x8] sm:$0xff] %v451_v24  ;;  %v450_v26 = vsel %vm449_vm2, %v441_v25, 0.0 }
 0x1d2   :  { %458 = vst [vmem:[#allocation2] sm:$0xff] %v450_v26  ;;  %v604_v27 = vpop.f32.mrb[10].mxu1 }
 0x1d3   :  { %v444_v29 = vsel %vm440_vm1, %v604_v27, %v423_v17  ;;  %v243_v30 = vpop.f32.mrb[11].mxu1 }
 0x1d4   :  { %v453_v32 = vsel %vm449_vm2, %v444_v29, 0.0  ;;  %v443_v33 = vsel %vm440_vm1, %v243_v30, %v421_v20 }
 0x1d5   :  { %461 = vst [vmem:[#allocation2 + $0x18] sm:$0xff] %v453_v32  ;;  %v452_v34 = vsel %vm449_vm2, %v443_v33, 0.0 }
 0x1d6   :  { %460 = vst [vmem:[#allocation2 + $0x10] sm:$0xff] %v452_v34  ;;  %v607_v35 = vpop.f32.mrb[12].mxu1 }
 0x1d7   :  { %v446_v36 = vsel %vm440_vm1, %v607_v35, %v427_v28  ;;  %v253_v37 = vpop.f32.mrb[13].mxu1 }
 0x1d8   :  { %v455_v38 = vsel %vm449_vm2, %v446_v36, 0.0  ;;  %v445_v39 = vsel %vm440_vm1, %v253_v37, %v425_v31 }
 0x1d9   :  { %463 = vst [vmem:[#allocation2 + $0x28] sm:$0xff] %v455_v38  ;;  %v454_v41 = vsel %vm449_vm2, %v445_v39, 0.0 }
 0x1da   :  { %462 = vst [vmem:[#allocation2 + $0x20] sm:$0xff] %v454_v41  ;;  %v610_v43 = vpop.f32.mrb[14].mxu1 }
 0x1db   :  { %v448_v44 = vsel %vm440_vm1, %v610_v43, %v431_v40  ;;  %v263_v45 = vpop.f32.mrb[15].mxu1 }
 0x1dc   :  { %v457_v46 = vsel %vm449_vm2, %v448_v44, 0.0  ;;  %v447_v47 = vsel %vm440_vm1, %v263_v45, %v429_v42 }
 0x1dd   :  { %465 = vst [vmem:[#allocation2 + $0x38] sm:$0xff] %v457_v46  ;;  %v456_v48 = vsel %vm449_vm2, %v447_v47, 0.0 }
 0x1de   :  { %464 = vst [vmem:[#allocation2 + $0x30] sm:$0xff] %v456_v48 }
 0x1df   :  { %734 = shalt.err (!%p731_p4)
}
 0x1e0   :  { %s735_s24 = scalar_lea.hbm %s985_s5, 1024 }
 0x1e1   :  { %p736_p5 = scmp.ne.s32.totalorder %s985_s5, %s735_s24  ;;  %p739_p6 = scmp.lt.u32.totalorder %s735_s24, %s985_s5 }
 0x1e3   :  { %p741_p7 = pnand %p739_p6, %p736_p5 }
 0x1e5   :  { %744 = shalt.err (!%p741_p7)
}
 0x1e6   :  { %s749_s29 = smov 128   ;;  %s750_s30 = smov 8  }
 0x1e7   :  { %477 = dma.vmem_to_hbm [thread:$0]  %s472_s21, 1024, %s985_s5, [#allocation3], %s749_s29, %s749_s29, %s750_s30  }
 0x1e8   :  { %745 = dma.done.wait [#allocation3], 1024  }
 0x1e9   :  { %746 = vsyncadd [#allocation3], 4294966272 }
 0x1ea   :  { %481 = vsyncpa [#allocation3], 1 }

</bundles_post_ra>
